<compile_context>
chip_gen: v6e
topology: v6e:2x2x1
jax: 0.10.0
libtpu: 0.0.40
codegen_flags: <defaults>
</compile_context>

<pallas_src>
import functools

import jax
import jax.numpy as jnp
from jax import lax
from jax.experimental import pallas as pl
from jax.experimental.pallas import tpu as pltpu


def _round_up(n, mult):
    return ((n + mult - 1) // mult) * mult


def _soft_threshold(v, thr, twosided):
    """Soft threshold.  twosided: v - clip(v,-thr,thr) == relu(|v|-thr)*sign(v)."""
    if twosided:
        return v - jnp.clip(v, -thr, thr)
    return jnp.maximum(v - thr, 0.0)


def _aedecay_kernel(x_ref, w_ref, a_ref, xhat_ref, z_ref,
                    *, num_layers, lam0, beta, step, twosided, chunk):
    """One batch-tile: full encode (num_layers ISTA steps) + decode.

    Lane-major layout (batch on the 128-lane axis):
      x_ref    : (m, TB)   input tile
      w_ref    : (m, p)    dictionary, resident across the grid
      a_ref    : (p, p)    A = I - step * W^T W, resident across the grid
      xhat_ref : (m, TB)   reconstruction output tile
      z_ref    : (p, TB)   sparse-code output tile
    """
    W = w_ref[...]                     # (m, p) f32
    A = a_ref[...]                     # (p, p) f32
    tb = x_ref.shape[1]
    n_chunks = tb // chunk

    def process_chunk(lane0):
        x = x_ref[:, pl.ds(lane0, chunk)]                     # (m, chunk)
        # b = step * W^T x   (p, chunk); contraction over dim 0 of both.
        b = step * lax.dot_general(W, x, (((0,), (0,)), ((), ())),
                                   preferred_element_type=jnp.float32)
        if num_layers == 0:
            z = jnp.zeros_like(b)
        else:
            # Iteration 0: z_prev = 0  =>  znew = b (matmul skipped).
            lam_k = lam0
            z = _soft_threshold(b, lam_k * step, twosided)
            # Remaining iterations (num_layers is a small static int -> unrolled).
            for _ in range(1, num_layers):
                lam_k = lam_k * beta
                znew = lax.dot_general(A, z, (((1,), (0,)), ((), ())),
                                       preferred_element_type=jnp.float32) + b
                z = _soft_threshold(znew, lam_k * step, twosided)
        z_ref[:, pl.ds(lane0, chunk)] = z
        # decode: xhat = W @ z  (m, chunk)
        xhat_ref[:, pl.ds(lane0, chunk)] = lax.dot_general(
            W, z, (((1,), (0,)), ((), ())), preferred_element_type=jnp.float32)

    if n_chunks == 1:
        process_chunk(0)
    else:
        # fori_loop (not a Python loop) bounds the per-chunk live ranges so the
        # unrolled ISTA working set stays register-resident at large tb.
        def body(ci, carry):
            process_chunk(pl.multiple_of(ci * chunk, chunk))
            return carry
        lax.fori_loop(0, n_chunks, body, 0, unroll=False)


def aedecay_forward(x, W, *, num_layers, lam, beta, step, twosided):
    """x: (B, m, 1) f32, W: (m, p) f32 -> (xhat (B,m,1), zT (B,p,1))."""
    B, m, _ = x.shape
    p = W.shape[1]
    lam = float(lam)
    beta = float(beta)
    step = float(step)
    twosided = bool(twosided)

    # Hoisted out of the kernel: A = I - step * W^T W  (p*p*4 B = 4 KiB here).
    # HIGHEST precision keeps the wrapper matmul full-f32 (matches PyTorch).
    G = jnp.dot(W.T, W, precision=lax.Precision.HIGHEST)
    A = jnp.eye(p, dtype=jnp.float32) - step * G

    # Lane-major input: batch on the lane axis, zero-padded to a multiple of
    # 128.  Transpose+pad in a single expression (one fused XLA copy).
    Bp = _round_up(B, 128)
    x_lm = jnp.pad(x.reshape(B, m).T, ((0, 0), (0, Bp - B)))   # (m, Bp)

    # Batch-tile width (lanes): biggest multiple-of-128 divisor of Bp, capped
    # at 2048.  VMEM is never the constraint at these shapes (per-tile
    # double-buffered footprint << 1 MiB even on v7x's 64 MiB); but when
    # Bp >= 256 keep >= 2 grid steps so the "parallel" grid axis can be
    # sharded across v7x's two TensorCores.
    max_tb = 2048
    if Bp >= 256:
        max_tb = min(max_tb, Bp // 2)
    tb = 128
    for cand in (2048, 1024, 512, 256, 128):
        if cand <= max_tb and Bp % cand == 0:
            tb = cand
            break
    grid = (Bp // tb,)
    chunk = min(256, tb)   # inner register-resident chunk of the tile

    kernel = functools.partial(
        _aedecay_kernel,
        num_layers=int(num_layers), lam0=lam, beta=beta, step=step,
        twosided=twosided, chunk=chunk)

    # Scheduler hint (G term dropped; W/A bytes counted once: they are
    # resident blocks, fetched a single time).
    n_blocks = grid[0]
    flops_per_tile = (2 * m * p * tb                              # b = step*W^T x
                      + max(num_layers - 1, 0) * 2 * p * p * tb   # ISTA A@z
                      + 2 * m * p * tb)                           # decode W@z
    cost = pl.CostEstimate(
        flops=flops_per_tile * n_blocks,
        transcendentals=0,
        bytes_accessed=4 * (m * Bp + m * p + p * p + m * Bp + p * Bp))

    xhat_lm, z_lm = pl.pallas_call(
        kernel,
        out_shape=(jax.ShapeDtypeStruct((m, Bp), jnp.float32),
                   jax.ShapeDtypeStruct((p, Bp), jnp.float32)),
        grid=grid,
        in_specs=[pl.BlockSpec((m, tb), lambda i: (0, i)),    # x tile
                  pl.BlockSpec((m, p), lambda i: (0, 0)),     # W resident
                  pl.BlockSpec((p, p), lambda i: (0, 0))],    # A resident
        out_specs=(pl.BlockSpec((m, tb), lambda i: (0, i)),   # xhat tile
                   pl.BlockSpec((p, tb), lambda i: (0, i))),  # z tile
        compiler_params=pltpu.CompilerParams(
            dimension_semantics=("parallel",)),
        cost_estimate=cost,
    )(x_lm, W, A)

    # Slice + transpose back to the module's (B, ., 1) layout (one fused copy
    # per output).  Downstream code that accepts lane-major (., Bp) could
    # consume xhat_lm / z_lm directly and skip this pass.
    xhat = xhat_lm[:, :B].T.reshape(B, m, 1)
    zT = z_lm[:, :B].T.reshape(B, p, 1)
    return xhat, zT


def _reference_forward(x, W, *, num_layers, lam, beta, step, twosided):
    """Pure-JAX mirror of the PyTorch forward (two matmuls per step)."""
    B, m, _ = x.shape
    p = W.shape[1]
    z = jnp.zeros((B, p, 1), jnp.float32)
    cur_lam = lam
    hi = lax.Precision.HIGHEST
    for k in range(num_layers):
        res = jnp.einsum('mp,bpi->bmi', W, z, precision=hi) - x
        grad = jnp.einsum('pm,bmi->bpi', W.T, res, precision=hi)
        if k > 0:
            cur_lam = cur_lam * beta
        znew = z - grad * step
        thr = cur_lam * step
        if twosided:
            z = jnp.maximum(jnp.abs(znew) - thr, 0.0) * jnp.sign(znew)
        else:
            z = jnp.maximum(znew - thr, 0.0)
    xhat = jnp.einsum('mp,bpi->bmi', W, z, precision=hi)
    return xhat, z


if __name__ == "__main__":
    # hyperparameters (what the module's __init__ reads from `hyp`)
    hyp = dict(m=16, p=32, lam=0.5, num_layers=5, twosided=True,
               beta=0.9, step=0.1)
    B = 4

    key = jax.random.PRNGKey(0)
    kW, kx = jax.random.split(key)

    # W = randn(m, p), normalized with p=2 along dim=0 (per column)
    W = jax.random.normal(kW, (hyp['m'], hyp['p']), dtype=jnp.float32)
    W = W / jnp.linalg.norm(W, axis=0, keepdims=True)

    # input x: (batch, m, 1)
    x = jax.random.normal(kx, (B, hyp['m'], 1), dtype=jnp.float32)

    xhat, zT = aedecay_forward(
        x, W, num_layers=hyp['num_layers'], lam=hyp['lam'],
        beta=hyp['beta'], step=hyp['step'], twosided=hyp['twosided'])
    jax.block_until_ready((xhat, zT))

    # correctness check against the pure-JAX reference
    xhat_ref, zT_ref = _reference_forward(
        x, W, num_layers=hyp['num_layers'], lam=hyp['lam'],
        beta=hyp['beta'], step=hyp['step'], twosided=hyp['twosided'])
    assert jnp.allclose(xhat, xhat_ref, atol=1e-4, rtol=1e-4)
    assert jnp.allclose(zT, zT_ref, atol=1e-4, rtol=1e-4)
    assert xhat.shape == (B, hyp['m'], 1) and zT.shape == (B, hyp['p'], 1)

    print("KERNEL_OK")
</pallas_src>

<mosaic_0001>
module attributes {stable_mosaic.version = 11 : i64} {
  func.func @_aedecay_kernel(%arg0: i32, %arg1: memref<16x128xf32, #tpu.memory_space<vmem>>, %arg2: memref<16x32xf32, #tpu.memory_space<vmem>>, %arg3: memref<32x32xf32, #tpu.memory_space<vmem>>, %arg4: memref<16x128xf32, #tpu.memory_space<vmem>>, %arg5: memref<32x128xf32, #tpu.memory_space<vmem>>) attributes {dimension_semantics = [#tpu.dimension_semantics<parallel>], iteration_bounds = array<i64: 1>, scalar_prefetch = 0 : i64, scratch_operands = 0 : i64, tpu.core_type = #tpu.core_type<tc>, window_params = [{transform_indices = @transform_0, window_bounds = array<i64: 16, 128>}, {pipeline_mode = #tpu.pipeline_mode<synchronous>, transform_indices = @transform_1, window_bounds = array<i64: 16, 32>}, {pipeline_mode = #tpu.pipeline_mode<synchronous>, transform_indices = @transform_2, window_bounds = array<i64: 32, 32>}, {transform_indices = @transform_3, window_bounds = array<i64: 16, 128>}, {transform_indices = @transform_4, window_bounds = array<i64: 32, 128>}]} {
    %c0 = arith.constant 0 : index
    %c0_0 = arith.constant 0 : index
    %0 = vector.load %arg2[%c0, %c0_0] : memref<16x32xf32, #tpu.memory_space<vmem>>, vector<16x32xf32>
    %c0_1 = arith.constant 0 : index
    %c0_2 = arith.constant 0 : index
    %1 = vector.load %arg3[%c0_1, %c0_2] : memref<32x32xf32, #tpu.memory_space<vmem>>, vector<32x32xf32>
    %c0_3 = arith.constant 0 : index
    %c0_4 = arith.constant 0 : index
    %2 = vector.load %arg1[%c0_3, %c0_4] : memref<16x128xf32, #tpu.memory_space<vmem>>, vector<16x128xf32>
    %cst = arith.constant dense<0.000000e+00> : vector<32x128xf32>
    %3 = tpu.matmul %0, %2, %cst {dimension_numbers = #tpu.dot_dimension_numbers<[0], [0], [1], [1], [0, 1, 1, 1], [], []>} : vector<16x32xf32>, vector<16x128xf32>, vector<32x128xf32> -> vector<32x128xf32>
    %cst_5 = arith.constant 1.000000e-01 : f32
    %4 = vector.broadcast %cst_5 : f32 to vector<32x128xf32>
    %5 = arith.mulf %4, %3 : vector<32x128xf32>
    %cst_6 = arith.constant -5.000000e-02 : f32
    %cst_7 = arith.constant 5.000000e-02 : f32
    %6 = vector.broadcast %cst_6 : f32 to vector<32x128xf32>
    %7 = arith.maximumf %6, %5 : vector<32x128xf32>
    %8 = vector.broadcast %cst_7 : f32 to vector<32x128xf32>
    %9 = arith.minimumf %8, %7 : vector<32x128xf32>
    %10 = arith.subf %5, %9 : vector<32x128xf32>
    %cst_8 = arith.constant dense<0.000000e+00> : vector<32x128xf32>
    %11 = tpu.matmul %1, %10, %cst_8 {dimension_numbers = #tpu.dot_dimension_numbers<[1], [0], [0], [1], [0, 0, 1, 1], [], []>} : vector<32x32xf32>, vector<32x128xf32>, vector<32x128xf32> -> vector<32x128xf32>
    %12 = arith.addf %11, %5 : vector<32x128xf32>
    %cst_9 = arith.constant -4.500000e-02 : f32
    %cst_10 = arith.constant 4.500000e-02 : f32
    %13 = vector.broadcast %cst_9 : f32 to vector<32x128xf32>
    %14 = arith.maximumf %13, %12 : vector<32x128xf32>
    %15 = vector.broadcast %cst_10 : f32 to vector<32x128xf32>
    %16 = arith.minimumf %15, %14 : vector<32x128xf32>
    %17 = arith.subf %12, %16 : vector<32x128xf32>
    %cst_11 = arith.constant dense<0.000000e+00> : vector<32x128xf32>
    %18 = tpu.matmul %1, %17, %cst_11 {dimension_numbers = #tpu.dot_dimension_numbers<[1], [0], [0], [1], [0, 0, 1, 1], [], []>} : vector<32x32xf32>, vector<32x128xf32>, vector<32x128xf32> -> vector<32x128xf32>
    %19 = arith.addf %18, %5 : vector<32x128xf32>
    %cst_12 = arith.constant -4.050000e-02 : f32
    %cst_13 = arith.constant 4.050000e-02 : f32
    %20 = vector.broadcast %cst_12 : f32 to vector<32x128xf32>
    %21 = arith.maximumf %20, %19 : vector<32x128xf32>
    %22 = vector.broadcast %cst_13 : f32 to vector<32x128xf32>
    %23 = arith.minimumf %22, %21 : vector<32x128xf32>
    %24 = arith.subf %19, %23 : vector<32x128xf32>
    %cst_14 = arith.constant dense<0.000000e+00> : vector<32x128xf32>
    %25 = tpu.matmul %1, %24, %cst_14 {dimension_numbers = #tpu.dot_dimension_numbers<[1], [0], [0], [1], [0, 0, 1, 1], [], []>} : vector<32x32xf32>, vector<32x128xf32>, vector<32x128xf32> -> vector<32x128xf32>
    %26 = arith.addf %25, %5 : vector<32x128xf32>
    %cst_15 = arith.constant -3.645000e-02 : f32
    %cst_16 = arith.constant 3.645000e-02 : f32
    %27 = vector.broadcast %cst_15 : f32 to vector<32x128xf32>
    %28 = arith.maximumf %27, %26 : vector<32x128xf32>
    %29 = vector.broadcast %cst_16 : f32 to vector<32x128xf32>
    %30 = arith.minimumf %29, %28 : vector<32x128xf32>
    %31 = arith.subf %26, %30 : vector<32x128xf32>
    %cst_17 = arith.constant dense<0.000000e+00> : vector<32x128xf32>
    %32 = tpu.matmul %1, %31, %cst_17 {dimension_numbers = #tpu.dot_dimension_numbers<[1], [0], [0], [1], [0, 0, 1, 1], [], []>} : vector<32x32xf32>, vector<32x128xf32>, vector<32x128xf32> -> vector<32x128xf32>
    %33 = arith.addf %32, %5 : vector<32x128xf32>
    %cst_18 = arith.constant -3.280500e-02 : f32
    %cst_19 = arith.constant 3.280500e-02 : f32
    %34 = vector.broadcast %cst_18 : f32 to vector<32x128xf32>
    %35 = arith.maximumf %34, %33 : vector<32x128xf32>
    %36 = vector.broadcast %cst_19 : f32 to vector<32x128xf32>
    %37 = arith.minimumf %36, %35 : vector<32x128xf32>
    %38 = arith.subf %33, %37 : vector<32x128xf32>
    %c0_20 = arith.constant 0 : index
    %c0_21 = arith.constant 0 : index
    %39 = vector.load %arg5[%c0_20, %c0_21] : memref<32x128xf32, #tpu.memory_space<vmem>>, vector<32x128xf32>
    tpu.vector_store %arg5[%c0_20, %c0_21], %38 {strides = array<i32>} : memref<32x128xf32, #tpu.memory_space<vmem>>, vector<32x128xf32>,
    %cst_22 = arith.constant dense<0.000000e+00> : vector<16x128xf32>
    %40 = tpu.matmul %0, %38, %cst_22 {dimension_numbers = #tpu.dot_dimension_numbers<[1], [0], [0], [1], [0, 0, 1, 1], [], []>} : vector<16x32xf32>, vector<32x128xf32>, vector<16x128xf32> -> vector<16x128xf32>
    %c0_23 = arith.constant 0 : index
    %c0_24 = arith.constant 0 : index
    %41 = vector.load %arg4[%c0_23, %c0_24] : memref<16x128xf32, #tpu.memory_space<vmem>>, vector<16x128xf32>
    tpu.vector_store %arg4[%c0_23, %c0_24], %40 {strides = array<i32>} : memref<16x128xf32, #tpu.memory_space<vmem>>, vector<16x128xf32>,
    return
  }
  func.func @transform_0(%arg0: i32) -> (i32, i32) {
    %c0_i32 = arith.constant 0 : i32
    %c0_i32_0 = arith.constant 0 : i32
    return %c0_i32, %arg0 : i32, i32
  }
  func.func @transform_1(%arg0: i32) -> (i32, i32) {
    %c0_i32 = arith.constant 0 : i32
    %c0_i32_0 = arith.constant 0 : i32
    %c0_i32_1 = arith.constant 0 : i32
    return %c0_i32, %c0_i32_0 : i32, i32
  }
  func.func @transform_2(%arg0: i32) -> (i32, i32) {
    %c0_i32 = arith.constant 0 : i32
    %c0_i32_0 = arith.constant 0 : i32
    %c0_i32_1 = arith.constant 0 : i32
    return %c0_i32, %c0_i32_0 : i32, i32
  }
  func.func @transform_3(%arg0: i32) -> (i32, i32) {
    %c0_i32 = arith.constant 0 : i32
    %c0_i32_0 = arith.constant 0 : i32
    return %c0_i32, %arg0 : i32, i32
  }
  func.func @transform_4(%arg0: i32) -> (i32, i32) {
    %c0_i32 = arith.constant 0 : i32
    %c0_i32_0 = arith.constant 0 : i32
    return %c0_i32, %arg0 : i32, i32
  }
}

</mosaic_0001>

<bundles_post_ra>
// kernel: tpu_custom_call.1
= control target key start
LH: loop header
LB: loop body
LE: loop exit
PB: predicated region body
PF: predicated region fallthrough
CT: control target
= control target key end

     0   :  { %10 = vsyncpa [#allocation3], 0  ;;  %s1152_s0 = inlined_call_operand.hbm [shape: f32[16,128], index: 0, kind: input, shape index: {}]   ;;  %s1153_s1 = inlined_call_operand.hbm [shape: f32[16,32], index: 1, kind: input, shape index: {}]   ;;  %s1154_s2 = inlined_call_operand.hbm [shape: f32[32,32], index: 2, kind: input, shape index: {}]   ;;  %s1155_s3 = inlined_call_operand.hbm [shape: f32[16,128], index: 3, kind: output, shape index: {0}]   ;;  %s1156_s4 = inlined_call_operand.hbm [shape: f32[32,128], index: 4, kind: output, shape index: {1}]  }
   0x1   :  { %11 = vsyncpa [#allocation6], 0 }
   0x2   :  { %12 = vsyncpa [#allocation4], 0 }
   0x3   :  { %13 = vsyncpa [#allocation10], 0  ;;  %s1014_s15 = smov [#allocation5]   ;;  %s1015_s17 = smov [#allocation2]  }
   0x4   :  { %s31_s16 = sshll.u32 %s1014_s15, 4  ;;  %s19_s18 = sshll.u32 %s1015_s17, 4  ;;  %s32_s16 = int_to_ptr.vmem [resolvable:$true] %s31_s16  ;;  %s20_s18 = int_to_ptr.vmem [resolvable:$true] %s19_s18 }
   0x5   :  { %s914_s19 = scalar_lea.vmem %s32_s16, 256  ;;  %p919_p1 = scmp.lt.s32.totalorder %s32_s16, %s32_s16 }
   0x6   :  { %p915_p0 = scmp.ne.s32.totalorder %s32_s16, %s914_s19  ;;  %p920_p2 = scmp.lt.s32.totalorder %s914_s19, %s914_s19 }
   0x8   :  { %p921_p3 = por %p920_p2, %p919_p1 }
   0xa   :  { %p922_p4 = pnand %p921_p3, %p915_p0 }
   0xc   :  { %925 = shalt.err (!%p922_p4)
}
   0xd   :  { %s1016_s20 = smov 128   ;;  %s1017_s21 = smov 8  }
   0xe   :  { %37 = dma.hbm_to_vmem [thread:$0]  %s1153_s1, 256, %s32_s16, [#allocation6], %s1016_s20, %s1016_s20, %s1017_s21  }
   0xf   :  { %s934_s24 = scalar_lea.vmem %s20_s18, 256  ;;  %p939_p6 = scmp.lt.s32.totalorder %s20_s18, %s20_s18 }
  0x10   :  { %p935_p5 = scmp.ne.s32.totalorder %s20_s18, %s934_s24  ;;  %p940_p7 = scmp.lt.s32.totalorder %s934_s24, %s934_s24 }
  0x12   :  { %p941_p8 = por %p940_p7, %p939_p6 }
  0x14   :  { %p942_p9 = pnand %p941_p8, %p935_p5 }
  0x16   :  { %945 = shalt.err (!%p942_p9)
}
  0x17   :  { %25 = dma.hbm_to_vmem [thread:$0]  %s1152_s0, 256, %s20_s18, [#allocation3], %s1016_s20, %s1016_s20, %s1017_s21  }
  0x18   :  { %s1018_s27 = smov [#allocation7]  }
  0x19   :  { %s43_s28 = sshll.u32 %s1018_s27, 4  ;;  %s44_s28 = int_to_ptr.vmem [resolvable:$true] %s43_s28 }
  0x1a   :  { %s954_s29 = scalar_lea.vmem %s44_s28, 512  ;;  %p959_p11 = scmp.lt.s32.totalorder %s44_s28, %s44_s28 }
  0x1b   :  { %p955_p10 = scmp.ne.s32.totalorder %s44_s28, %s954_s29  ;;  %p960_p12 = scmp.lt.s32.totalorder %s954_s29, %s954_s29 }
  0x1d   :  { %p961_p13 = por %p960_p12, %p959_p11 }
  0x1f   :  { %p962_p0 = pnand %p961_p13, %p955_p10 }
  0x21   :  { %965 = shalt.err (!%p962_p0)
}
  0x22   :  { %49 = dma.hbm_to_vmem [thread:$0]  %s1154_s2, 512, %s44_s28, [#allocation6], %s1016_s20, %s1016_s20, %s1017_s21  }
  0x23   :  { %1006 = dma.done.wait [#allocation3], 256  }
  0x24   :  { %1007 = vsyncadd [#allocation3], 4294967040 }
  0x25   :  { %1008 = dma.done.wait [#allocation6], 768  }
  0x26   :  { %1009 = vsyncadd [#allocation6], 4294966528  ;;  %v1064_v0 = vld [vmem:[#allocation5] sm:$0xff]  ;;  %v66_v1 = vld [vmem:[#allocation2 + $0x8] sm:$0xff]  ;;  %vm99_vm0 = vcmask 130048   ;;  %vm213_vm1 = vcmask 261120  }
  0x27   :  { %67 = vxpose.xlu0.b32.start [1/2] (short) (narrow) %v1064_v0, 32  ;;  %821 = vmatprep.subr.mxu0 %v66_v1  ;;  %v65_v2 = vld [vmem:[#allocation2] sm:$0xff]  ;;  %v1067_v3 = vld [vmem:[#allocation5 + $0x8] sm:$0xff]  ;;  %v1088_v25 = vld [vmem:[#allocation7 + $0x8] sm:$0xff]  ;;  %s1019_s0 = smov [#allocation9]  }
  0x28   :  { %822 = vmatpush3.msra.mxu0 %v66_v1  ;;  %v61_v8 = vld [vmem:[#allocation7] sm:$0xff]  ;;  %v1090_v26 = vld [vmem:[#allocation7 + $0x10] sm:$0xff]  ;;  %v1096_v27 = vld [vmem:[#allocation7 + $0x18] sm:$0xff]  ;;  %s718_s2 = sshll.u32 %s1019_s0, 4  ;;  %s719_s2 = int_to_ptr.vmem [resolvable:$true] %s718_s2 }
  0x29   :  { %823 = vmatprep.subr.mxu0 %v65_v2  ;;  %839 = vmatprep.mubr.msk.f32.mxu1 %vm213_vm1, %v61_v8  ;;  %s966_s5 = scalar_lea.vmem %s719_s2, 512  ;;  %p971_p2 = scmp.lt.s32.totalorder %s719_s2, %s719_s2 }
  0x2a   :  { %824 = vmatpush3.msra.mxu0 %v65_v2  ;;  %p967_p1 = scmp.ne.s32.totalorder %s719_s2, %s966_s5  ;;  %p972_p3 = scmp.lt.s32.totalorder %s966_s5, %s966_s5 }
  0x2b   :  { %68 = vxpose.xlu0.b32.end [2/2] (short) (narrow) %v1067_v3, 32 }
  0x2c   :  { %p973_p4 = por %p972_p3, %p971_p2 }
  0x2e   :  { %p974_p5 = pnand %p973_p4, %p967_p1 }
  0xa3   :  { %v83_v4 = vpop.trf.xlu0 }
  0xa4   :  { %825 = vmatprep.mubr.msk.f32.mxu0 %vm99_vm0, %v83_v4 }
  0xa7   :  { %v84_v5 = vpop.trf.xlu0 }
  0xa8   :  { %826 = vmatmul.mubr.msk.f32.vlgmr.msra.gmra.mxu0 %vm99_vm0, %v84_v5 }
  0xab   :  { %v85_v6 = vpop.trf.xlu0 }
  0xac   :  { %828 = vmatprep.mubr.msk.f32.mxu0 %vm99_vm0, %v85_v6 }
  0xaf   :  { %v86_v7 = vpop.trf.xlu0 }
  0xb0   :  { %829 = vmatmul.mubr.msk.f32.gmra.mxu0 %vm99_vm0, %v86_v7 }
  0xb1   :  { %853 = vmatprep.mubr.msk.f32.mxu0 %vm213_vm1, %v61_v8 }
 0x168   :  { %v827_v9 = vpop.f32.mrf.mxu0 }
 0x169   :  { %v1072_v12 = vmul.f32 0.1, %v827_v9 }
 0x16a   :  { %v178_v10 = vpop.f32.mrf.mxu0 }
 0x16b   :  { %v1076_v15 = vmul.f32 0.1, %v178_v10  ;;  %v740_v20 = vclamps-f32 %v1072_v12, 0.05 }
 0x16d   :  { %v739_v22 = vclamps-f32 %v1076_v15, 0.05  ;;  %v210_v23 = vsub.f32 %v1072_v12, %v740_v20 }
 0x16f   :  { %v209_v24 = vsub.f32 %v1076_v15, %v739_v22 }
 0x170   :  { %v830_v11 = vpop.f32.mrf.mxu0 }
 0x171   :  { %v1074_v13 = vmul.f32 0.1, %v830_v11 }
 0x172   :  { %v188_v14 = vpop.f32.mrf.mxu0 }
 0x173   :  { %v1078_v16 = vmul.f32 0.1, %v188_v14  ;;  %v742_v17 = vclamps-f32 %v1074_v13, 0.05 }
 0x175   :  { %v212_v18 = vsub.f32 %v1074_v13, %v742_v17  ;;  %v741_v19 = vclamps-f32 %v1078_v16, 0.05 }
 0x177   :  { %831 = vmatprep.subr.mxu1 %v212_v18  ;;  %v211_v21 = vsub.f32 %v1078_v16, %v741_v19 }
 0x178   :  { %832 = vmatpush3.msra.mxu1 %v212_v18 }
 0x179   :  { %833 = vmatprep.subr.mxu1 %v211_v21 }
 0x17a   :  { %834 = vmatpush3.msra.mxu1 %v211_v21 }
 0x17b   :  { %835 = vmatprep.subr.mxu1 %v210_v23 }
 0x17c   :  { %836 = vmatpush3.msra.mxu1 %v210_v23 }
 0x17d   :  { %837 = vmatprep.subr.mxu1 %v209_v24 }
 0x17e   :  { %838 = vmatpush3.msra.mxu1 %v209_v24 }
 0x17f   :  { %840 = vmatmul.mubr.msk.f32.vlgmr.msra.gmra.mxu1 %vm213_vm1, %v1088_v25 }
 0x180   :  { %842 = vmatprep.mubr.msk.f32.mxu1 %vm213_vm1, %v1090_v26 }
 0x183   :  { %843 = vmatmul.mubr.msk.f32.gmra.mxu1 %vm213_vm1, %v1096_v27 }
 0x184   :  { %867 = vmatprep.mubr.msk.f32.mxu1 %vm213_vm1, %v61_v8 }
 0x23f   :  { %v841_v28 = vpop.f32.mrf.mxu1 }
 0x240   :  { %v298_v31 = vadd.f32 %v841_v28, %v1072_v12 }
 0x241   :  { %v292_v29 = vpop.f32.mrf.mxu1 }
 0x242   :  { %v293_v34 = vadd.f32 %v292_v29, %v1076_v15  ;;  %v748_v37 = vclamps-f32 %v298_v31, 0.045 }
 0x243   :  { %v844_v30 = vpop.f32.mrf.mxu1 }
 0x244   :  { %v308_v32 = vadd.f32 %v844_v30, %v1074_v13  ;;  %v747_v40 = vclamps-f32 %v293_v34, 0.045  ;;  %v320_v42 = vsub.f32 %v298_v31, %v748_v37 }
 0x245   :  { %v302_v33 = vpop.f32.mrf.mxu1 }
 0x246   :  { %v750_v35 = vclamps-f32 %v308_v32, 0.045  ;;  %v303_v36 = vadd.f32 %v302_v33, %v1078_v16  ;;  %v319_v43 = vsub.f32 %v293_v34, %v747_v40 }
 0x248   :  { %v322_v38 = vsub.f32 %v308_v32, %v750_v35  ;;  %v749_v39 = vclamps-f32 %v303_v36, 0.045 }
 0x24a   :  { %v321_v41 = vsub.f32 %v303_v36, %v749_v39  ;;  %845 = vmatprep.subr.mxu0 %v322_v38 }
 0x24b   :  { %846 = vmatpush3.msra.mxu0 %v322_v38 }
 0x24c   :  { %847 = vmatprep.subr.mxu0 %v321_v41 }
 0x24d   :  { %848 = vmatpush3.msra.mxu0 %v321_v41 }
 0x24e   :  { %849 = vmatprep.subr.mxu0 %v320_v42 }
 0x24f   :  { %850 = vmatpush3.msra.mxu0 %v320_v42 }
 0x250   :  { %851 = vmatprep.subr.mxu0 %v319_v43 }
 0x251   :  { %852 = vmatpush3.msra.mxu0 %v319_v43 }
 0x252   :  { %854 = vmatmul.mubr.msk.f32.vlgmr.msra.gmra.mxu0 %vm213_vm1, %v1088_v25 }
 0x253   :  { %856 = vmatprep.mubr.msk.f32.mxu0 %vm213_vm1, %v1090_v26 }
 0x256   :  { %857 = vmatmul.mubr.msk.f32.gmra.mxu0 %vm213_vm1, %v1096_v27 }
 0x257   :  { %881 = vmatprep.mubr.msk.f32.mxu0 %vm213_vm1, %v61_v8 }
 0x312   :  { %v855_v44 = vpop.f32.mrf.mxu0 }
 0x313   :  { %v395_v47 = vadd.f32 %v855_v44, %v1072_v12 }
 0x314   :  { %v389_v45 = vpop.f32.mrf.mxu0 }
 0x315   :  { %v390_v50 = vadd.f32 %v389_v45, %v1076_v15  ;;  %v756_v53 = vclamps-f32 %v395_v47, 0.0405 }
 0x316   :  { %v858_v46 = vpop.f32.mrf.mxu0 }
 0x317   :  { %v405_v48 = vadd.f32 %v858_v46, %v1074_v13  ;;  %v755_v56 = vclamps-f32 %v390_v50, 0.0405  ;;  %v417_v58 = vsub.f32 %v395_v47, %v756_v53 }
 0x318   :  { %v399_v49 = vpop.f32.mrf.mxu0 }
 0x319   :  { %v758_v51 = vclamps-f32 %v405_v48, 0.0405  ;;  %v400_v52 = vadd.f32 %v399_v49, %v1078_v16  ;;  %v416_v59 = vsub.f32 %v390_v50, %v755_v56 }
 0x31b   :  { %v419_v54 = vsub.f32 %v405_v48, %v758_v51  ;;  %v757_v55 = vclamps-f32 %v400_v52, 0.0405 }
 0x31d   :  { %v418_v57 = vsub.f32 %v400_v52, %v757_v55  ;;  %859 = vmatprep.subr.mxu1 %v419_v54 }
 0x31e   :  { %860 = vmatpush3.msra.mxu1 %v419_v54 }
 0x31f   :  { %861 = vmatprep.subr.mxu1 %v418_v57 }
 0x320   :  { %862 = vmatpush3.msra.mxu1 %v418_v57 }
 0x321   :  { %863 = vmatprep.subr.mxu1 %v417_v58 }
 0x322   :  { %864 = vmatpush3.msra.mxu1 %v417_v58 }
 0x323   :  { %865 = vmatprep.subr.mxu1 %v416_v59 }
 0x324   :  { %866 = vmatpush3.msra.mxu1 %v416_v59 }
 0x325   :  { %868 = vmatmul.mubr.msk.f32.vlgmr.msra.gmra.mxu1 %vm213_vm1, %v1088_v25 }
 0x326   :  { %870 = vmatprep.mubr.msk.f32.mxu1 %vm213_vm1, %v1090_v26 }
 0x329   :  { %871 = vmatmul.mubr.msk.f32.gmra.mxu1 %vm213_vm1, %v1096_v27 }
 0x32a   :  { %895 = vmatprep.mubr.msk.f32.mxu1 %vm213_vm1, %v1064_v0 }
 0x3e5   :  { %v869_v60 = vpop.f32.mrf.mxu1 }
 0x3e6   :  { %v492_v63 = vadd.f32 %v869_v60, %v1072_v12 }
 0x3e7   :  { %v486_v61 = vpop.f32.mrf.mxu1 }
 0x3e8   :  { %v487_v4 = vadd.f32 %v486_v61, %v1076_v15  ;;  %v764_v7 = vclamps-f32 %v492_v63, 0.03645 }
 0x3e9   :  { %v872_v62 = vpop.f32.mrf.mxu1 }
 0x3ea   :  { %v502_v1 = vadd.f32 %v872_v62, %v1074_v13  ;;  %v763_v10 = vclamps-f32 %v487_v4, 0.03645  ;;  %v514_v0 = vsub.f32 %v492_v63, %v764_v7 }
 0x3eb   :  { %v496_v2 = vpop.f32.mrf.mxu1 }
 0x3ec   :  { %v766_v5 = vclamps-f32 %v502_v1, 0.03645  ;;  %v497_v6 = vadd.f32 %v496_v2, %v1078_v16  ;;  %v513_v14 = vsub.f32 %v487_v4, %v763_v10 }
 0x3ee   :  { %v516_v8 = vsub.f32 %v502_v1, %v766_v5  ;;  %v765_v9 = vclamps-f32 %v497_v6, 0.03645 }
 0x3f0   :  { %v515_v11 = vsub.f32 %v497_v6, %v765_v9  ;;  %873 = vmatprep.subr.mxu0 %v516_v8 }
 0x3f1   :  { %874 = vmatpush3.msra.mxu0 %v516_v8 }
 0x3f2   :  { %875 = vmatprep.subr.mxu0 %v515_v11 }
 0x3f3   :  { %876 = vmatpush3.msra.mxu0 %v515_v11 }
 0x3f4   :  { %877 = vmatprep.subr.mxu0 %v514_v0 }
 0x3f5   :  { %878 = vmatpush3.msra.mxu0 %v514_v0 }
 0x3f6   :  { %879 = vmatprep.subr.mxu0 %v513_v14 }
 0x3f7   :  { %880 = vmatpush3.msra.mxu0 %v513_v14 }
 0x3f8   :  { %882 = vmatmul.mubr.msk.f32.vlgmr.msra.gmra.mxu0 %vm213_vm1, %v1088_v25 }
 0x3f9   :  { %884 = vmatprep.mubr.msk.f32.mxu0 %vm213_vm1, %v1090_v26 }
 0x3fc   :  { %885 = vmatmul.mubr.msk.f32.gmra.mxu0 %vm213_vm1, %v1096_v27 }
 0x4b8   :  { %v883_v17 = vpop.f32.mrf.mxu0 }
 0x4b9   :  { %v589_v18 = vadd.f32 %v883_v17, %v1072_v12 }
 0x4ba   :  { %v583_v19 = vpop.f32.mrf.mxu0 }
 0x4bb   :  { %v772_v20 = vclamps-f32 %v589_v18, 0.032805  ;;  %v584_v21 = vadd.f32 %v583_v19, %v1076_v15 }
 0x4bc   :  { %v886_v22 = vpop.f32.mrf.mxu0 }
 0x4bd   :  { %v611_v23 = vsub.f32 %v589_v18, %v772_v20  ;;  %v771_v24 = vclamps-f32 %v584_v21, 0.032805  ;;  %v599_v28 = vadd.f32 %v886_v22, %v1074_v13 }
 0x4be   :  { %v593_v29 = vpop.f32.mrf.mxu0 }
 0x4bf   :  { %615 = vst [vmem:[#allocation9 + $0x8] sm:$0xff] %v611_v23  ;;  %v610_v25 = vsub.f32 %v584_v21, %v771_v24  ;;  %v774_v30 = vclamps-f32 %v599_v28, 0.032805  ;;  %v594_v26 = vadd.f32 %v593_v29, %v1078_v16 }
 0x4c1   :  { %614 = vst [vmem:[#allocation9] sm:$0xff] %v610_v25  ;;  %v613_v27 = vsub.f32 %v599_v28, %v774_v30  ;;  %v773_v31 = vclamps-f32 %v594_v26, 0.032805 }
 0x4c3   :  { %617 = vst [vmem:[#allocation9 + $0x18] sm:$0xff] %v613_v27  ;;  %v612_v12 = vsub.f32 %v594_v26, %v773_v31  ;;  %887 = vmatprep.subr.mxu1 %v613_v27 }
 0x4c4   :  { %888 = vmatpush3.msra.mxu1 %v613_v27 }
 0x4c5   :  { %616 = vst [vmem:[#allocation9 + $0x10] sm:$0xff] %v612_v12  ;;  %889 = vmatprep.subr.mxu1 %v612_v12 }
 0x4c6   :  { %890 = vmatpush3.msra.mxu1 %v612_v12 }
 0x4c7   :  { %891 = vmatprep.subr.mxu1 %v611_v23 }
 0x4c8   :  { %892 = vmatpush3.msra.mxu1 %v611_v23 }
 0x4c9   :  { %893 = vmatprep.subr.mxu1 %v610_v25 }
 0x4ca   :  { %894 = vmatpush3.msra.mxu1 %v610_v25 }
 0x4cb   :  { %896 = vmatmul.mubr.msk.f32.vlgmr.msra.gmra.mxu1 %vm213_vm1, %v1067_v3 }
 0x4cc   :  { %977 = shalt.err (!%p974_p5)
}
 0x4cd   :  { %724 = dma.vmem_to_hbm [thread:$0]  %s719_s2, 512, %s1156_s4, [#allocation10], %s1016_s20, %s1016_s20, %s1017_s21  }
 0x4ce   :  { %s1020_s8 = smov [#allocation8]  }
 0x4cf   :  { %s706_s9 = sshll.u32 %s1020_s8, 4  ;;  %s707_s9 = int_to_ptr.vmem [resolvable:$true] %s706_s9 }
 0x4d0   :  { %s986_s10 = scalar_lea.vmem %s707_s9, 256  ;;  %p991_p7 = scmp.lt.s32.totalorder %s707_s9, %s707_s9 }
 0x4d1   :  { %p987_p6 = scmp.ne.s32.totalorder %s707_s9, %s986_s10  ;;  %p992_p8 = scmp.lt.s32.totalorder %s986_s10, %s986_s10 }
 0x4d3   :  { %p993_p9 = por %p992_p8, %p991_p7 }
 0x4d5   :  { %p994_p10 = pnand %p993_p9, %p987_p6 }
 0x58b   :  { %v897_v3 = vpop.f32.mrf.mxu1 }
 0x58c   :  { %700 = vst [vmem:[#allocation8 + $0x8] sm:$0xff] %v897_v3 }
 0x58d   :  { %v690_v13 = vpop.f32.mrf.mxu1 }
 0x58e   :  { %699 = vst [vmem:[#allocation8] sm:$0xff] %v690_v13 }
 0x58f   :  { %997 = shalt.err (!%p994_p10)
}
 0x590   :  { %712 = dma.vmem_to_hbm [thread:$0]  %s707_s9, 256, %s1155_s3, [#allocation4], %s1016_s20, %s1016_s20, %s1017_s21  }
 0x591   :  { %1010 = dma.done.wait [#allocation4], 256  }
 0x592   :  { %1011 = vsyncadd [#allocation4], 4294967040 }
 0x593   :  { %1012 = dma.done.wait [#allocation10], 512  }
 0x594   :  { %1013 = vsyncadd [#allocation10], 4294966784 }
 0x595   :  { %731 = vsyncpa [#allocation3], 1 }
 0x596   :  { %732 = vsyncpa [#allocation6], 1 }
 0x597   :  { %733 = vsyncpa [#allocation4], 1 }
 0x598   :  { %734 = vsyncpa [#allocation10], 1 }

</bundles_post_ra>
